<compile_context>
chip_gen: v7x
topology: tpu7x:2x2x1
jax: 0.10.0
libtpu: 0.0.40
codegen_flags: <defaults>
</compile_context>

<pallas_src>
import functools

import jax
import jax.numpy as jnp
from jax.experimental import pallas as pl
from jax.experimental.pallas import tpu as pltpu


def _round_up(x, m):
    return ((x + m - 1) // m) * m


def _choose_tile(N, tm_max=2048, tm_min=256):
    """Pick a lane-dense batch tile (multiple of 256, <= tm_max).

    Keeps at least two grid tiles whenever the batch spans more than one
    minimum tile so the 'parallel' grid axis shards across both TCs on v7x.
    """
    n256 = _round_up(max(N, 1), 256)
    if n256 <= tm_min:
        tm = tm_min
    else:
        half = _round_up((n256 + 1) // 2, 256)          # two roughly equal tiles
        tm = max(tm_min, min(tm_max, half))
    Np = _round_up(N, tm)
    return tm, Np


def mlp_kernel(xt_ref, w1_ref, b1_ref, w2_ref, b2_ref, w3_ref, b3_ref, o_ref):
    """One batch tile, transposed layout.

    xt_ref : (1, tm)  f32   input row (batch in lanes)
    w1_ref : (Hp, 1)  f32   b1_ref : (Hp, 1) f32
    w2_ref : (Hp, Hp) f32|bf16   b2_ref : (Hp, 1) f32
    w3_ref : (O, Hp)  f32|bf16   b3_ref : (O, 1)  f32
    o_ref  : (O, tm)  f32   lane-dense output tile
    """
    x = xt_ref[...]                                                  # (1, tm)

    # Layer 1 (contraction length 1): rank-1 outer product on the VPU, f32.
    h1 = jnp.maximum(w1_ref[...] * x + b1_ref[...], 0.0)            # (Hp, tm)

    mxu_dtype = w2_ref.dtype   # bf16 -> native MXU rate; f32 -> exact path

    # Layer 2: the only real MXU matmul, (Hp, Hp) @ (Hp, tm), f32 accumulate.
    h2 = jnp.dot(w2_ref[...], h1.astype(mxu_dtype),
                 preferred_element_type=jnp.float32)
    h2 = jnp.maximum(h2 + b2_ref[...], 0.0)                          # (Hp, tm)

    # Layer 3: (O, Hp) @ (Hp, tm) -> (O, tm); stays lane-dense for full stores.
    out = jnp.dot(w3_ref[...], h2.astype(mxu_dtype),
                  preferred_element_type=jnp.float32)
    o_ref[...] = (out + b3_ref[...]).astype(o_ref.dtype)


def prepare_params(params, *, matmul_dtype=jnp.bfloat16):
    """Pad / cast parameters ONCE (hoisted out of the per-call path).

    PyTorch (out, in) layout; hidden dim zero-padded to a multiple of 128
    (exact through ReLU / matmul). w2/w3 are cast to `matmul_dtype` for the MXU.
    """
    f32 = jnp.float32
    H = params["w1"].shape[0]
    O = params["w3"].shape[0]
    Hp = _round_up(H, 128)

    w1 = jnp.zeros((Hp, 1), f32).at[:H, :].set(params["w1"].astype(f32))
    b1 = jnp.zeros((Hp, 1), f32).at[:H, 0].set(params["b1"].astype(f32))
    w2 = (jnp.zeros((Hp, Hp), f32).at[:H, :H].set(params["w2"].astype(f32))
          .astype(matmul_dtype))
    b2 = jnp.zeros((Hp, 1), f32).at[:H, 0].set(params["b2"].astype(f32))
    w3 = (jnp.zeros((O, Hp), f32).at[:, :H].set(params["w3"].astype(f32))
          .astype(matmul_dtype))
    b3 = params["b3"].astype(f32).reshape(O, 1)
    return {"w1": w1, "b1": b1, "w2": w2, "b2": b2, "w3": w3, "b3": b3}


@functools.partial(jax.jit, static_argnames=("tm_max",))
def net_forward(x, prepped, tm_max=2048):
    """Forward pass of Net. x: (N, 1) float32, prepped = prepare_params(...)."""
    N, in_dim = x.shape
    assert in_dim == 1
    f32 = jnp.float32
    Hp = prepped["w2"].shape[0]
    O = prepped["w3"].shape[0]

    tm, Np = _choose_tile(N, tm_max=tm_max)
    grid = (Np // tm,)

    # Per-call layout glue only: transpose x to (1, N) (batch in lanes), zero-pad.
    xt = jnp.zeros((1, Np), f32).at[0, :N].set(x[:, 0].astype(f32))

    full = lambda shape: pl.BlockSpec(shape, lambda i: (0, 0))

    wbytes = jnp.dtype(prepped["w2"].dtype).itemsize
    flops = 2 * Np * Hp * (1 + Hp + O)
    bytes_accessed = (4 * Np * (1 + O)                       # x in, out
                      + wbytes * (Hp * Hp + Hp * O)          # w2, w3
                      + 4 * (2 * Hp + Hp + O))               # w1, b1, b2, b3

    out_t = pl.pallas_call(
        mlp_kernel,
        out_shape=jax.ShapeDtypeStruct((O, Np), f32),
        grid_spec=pltpu.PrefetchScalarGridSpec(
            num_scalar_prefetch=0,
            grid=grid,
            in_specs=[
                pl.BlockSpec((1, tm), lambda i: (0, i)),   # x^T batch tile (lane-dense)
                full((Hp, 1)),                              # w1
                full((Hp, 1)),                              # b1
                full((Hp, Hp)),                             # w2 (resident across grid)
                full((Hp, 1)),                              # b2
                full((O, Hp)),                              # w3
                full((O, 1)),                               # b3
            ],
            out_specs=pl.BlockSpec((O, tm), lambda i: (0, i)),
        ),
        compiler_params=pltpu.CompilerParams(
            dimension_semantics=("parallel",),   # shards batch tiles across TCs on v7x
            vmem_limit_bytes=48 * 1024 * 1024,   # stays under v7x's 64 MiB physical VMEM
        ),
        cost_estimate=pl.CostEstimate(
            flops=flops, transcendentals=0, bytes_accessed=bytes_accessed),
    )(xt, prepped["w1"], prepped["b1"], prepped["w2"], prepped["b2"],
      prepped["w3"], prepped["b3"])

    # (O, Np) -> (N, O): slice off batch padding, transpose back (glue, outside kernel).
    return out_t[:, :N].T


def init_params(key, n_hidden=100, output_size=1):
    """Deterministic init mimicking nn.Linear's uniform(-1/sqrt(fan_in), ...)."""
    ks = jax.random.split(key, 6)

    def lin(kw, kb, fan_in, fan_out):
        bound = 1.0 / jnp.sqrt(jnp.float32(fan_in))
        w = jax.random.uniform(kw, (fan_out, fan_in), jnp.float32, -bound, bound)
        b = jax.random.uniform(kb, (fan_out,), jnp.float32, -bound, bound)
        return w, b

    w1, b1 = lin(ks[0], ks[1], 1, n_hidden)
    w2, b2 = lin(ks[2], ks[3], n_hidden, n_hidden)
    w3, b3 = lin(ks[4], ks[5], n_hidden, output_size)
    return {"w1": w1, "b1": b1, "w2": w2, "b2": b2, "w3": w3, "b3": b3}


def net_reference(x, p):
    h = jnp.maximum(x @ p["w1"].T + p["b1"], 0.0)
    h = jnp.maximum(h @ p["w2"].T + p["b2"], 0.0)
    return h @ p["w3"].T + p["b3"]


if __name__ == "__main__":
    key = jax.random.PRNGKey(0)
    k_param, k_x = jax.random.split(key)

    n_hidden = 100   # module default; wrapper zero-pads to 128 internally (exact)
    params = init_params(k_param, n_hidden=n_hidden, output_size=1)

    N = 300          # not a multiple of the tile: exercises padding + a 2-tile grid
    x = jax.random.uniform(k_x, (N, 1), jnp.float32, -1.0, 1.0)

    ref = net_reference(x, params)

    # Exact (f32 MXU) path — tight tolerance.
    p_f32 = prepare_params(params, matmul_dtype=jnp.float32)
    out_f32 = jax.block_until_ready(net_forward(x, p_f32))
    assert out_f32.shape == (N, 1)
    assert jnp.allclose(out_f32, ref, atol=2e-5, rtol=2e-5), "f32 mismatch vs reference"

    # Fast (bf16-operand MXU, f32 accumulate) path — looser tolerance.
    p_bf16 = prepare_params(params, matmul_dtype=jnp.bfloat16)
    out_bf16 = jax.block_until_ready(net_forward(x, p_bf16))
    assert out_bf16.shape == (N, 1)
    assert jnp.allclose(out_bf16, ref, atol=5e-2, rtol=5e-2), "bf16 mismatch vs reference"

    print("KERNEL_OK")
</pallas_src>

<mosaic_0001>
module attributes {stable_mosaic.version = 11 : i64} {
  func.func @mlp_kernel(%arg0: i32, %arg1: memref<1x256xf32, #tpu.memory_space<vmem>>, %arg2: memref<128x1xf32, #tpu.memory_space<vmem>>, %arg3: memref<128x1xf32, #tpu.memory_space<vmem>>, %arg4: memref<128x128xf32, #tpu.memory_space<vmem>>, %arg5: memref<128x1xf32, #tpu.memory_space<vmem>>, %arg6: memref<1x128xf32, #tpu.memory_space<vmem>>, %arg7: memref<1x1xf32, #tpu.memory_space<vmem>>, %arg8: memref<1x256xf32, #tpu.memory_space<vmem>>) attributes {dimension_semantics = [#tpu.dimension_semantics<parallel>], iteration_bounds = array<i64: 2>, scalar_prefetch = 0 : i64, scratch_operands = 0 : i64, tpu.core_type = #tpu.core_type<tc>, window_params = [{transform_indices = @transform_0, window_bounds = array<i64: 1, 256>}, {pipeline_mode = #tpu.pipeline_mode<synchronous>, transform_indices = @transform_1, window_bounds = array<i64: 128, 1>}, {pipeline_mode = #tpu.pipeline_mode<synchronous>, transform_indices = @transform_2, window_bounds = array<i64: 128, 1>}, {pipeline_mode = #tpu.pipeline_mode<synchronous>, transform_indices = @transform_3, window_bounds = array<i64: 128, 128>}, {pipeline_mode = #tpu.pipeline_mode<synchronous>, transform_indices = @transform_4, window_bounds = array<i64: 128, 1>}, {pipeline_mode = #tpu.pipeline_mode<synchronous>, transform_indices = @transform_5, window_bounds = array<i64: 1, 128>}, {pipeline_mode = #tpu.pipeline_mode<synchronous>, transform_indices = @transform_6, window_bounds = array<i64: 1, 1>}, {transform_indices = @transform_7, window_bounds = array<i64: 1, 256>}]} {
    %c0 = arith.constant 0 : index
    %c0_0 = arith.constant 0 : index
    %0 = vector.load %arg1[%c0, %c0_0] : memref<1x256xf32, #tpu.memory_space<vmem>>, vector<1x256xf32>
    %c0_1 = arith.constant 0 : index
    %c0_2 = arith.constant 0 : index
    %1 = vector.load %arg2[%c0_1, %c0_2] : memref<128x1xf32, #tpu.memory_space<vmem>>, vector<128x1xf32>
    %2 = vector.broadcast %1 : vector<128x1xf32> to vector<128x256xf32>
    %3 = vector.broadcast %0 : vector<1x256xf32> to vector<128x256xf32>
    %4 = arith.mulf %2, %3 : vector<128x256xf32>
    %c0_3 = arith.constant 0 : index
    %c0_4 = arith.constant 0 : index
    %5 = vector.load %arg3[%c0_3, %c0_4] : memref<128x1xf32, #tpu.memory_space<vmem>>, vector<128x1xf32>
    %6 = vector.broadcast %5 : vector<128x1xf32> to vector<128x256xf32>
    %7 = arith.addf %4, %6 : vector<128x256xf32>
    %cst = arith.constant 0.000000e+00 : f32
    %8 = vector.broadcast %cst : f32 to vector<128x256xf32>
    %9 = arith.maximumf %7, %8 : vector<128x256xf32>
    %c0_5 = arith.constant 0 : index
    %c0_6 = arith.constant 0 : index
    %10 = vector.load %arg4[%c0_5, %c0_6] : memref<128x128xf32, #tpu.memory_space<vmem>>, vector<128x128xf32>
    %cst_7 = arith.constant dense<0.000000e+00> : vector<128x256xf32>
    %11 = tpu.matmul %10, %9, %cst_7 {dimension_numbers = #tpu.dot_dimension_numbers<[1], [0], [0], [1], [0, 0, 1, 1], [], []>} : vector<128x128xf32>, vector<128x256xf32>, vector<128x256xf32> -> vector<128x256xf32>
    %c0_8 = arith.constant 0 : index
    %c0_9 = arith.constant 0 : index
    %12 = vector.load %arg5[%c0_8, %c0_9] : memref<128x1xf32, #tpu.memory_space<vmem>>, vector<128x1xf32>
    %13 = vector.broadcast %12 : vector<128x1xf32> to vector<128x256xf32>
    %14 = arith.addf %11, %13 : vector<128x256xf32>
    %cst_10 = arith.constant 0.000000e+00 : f32
    %15 = vector.broadcast %cst_10 : f32 to vector<128x256xf32>
    %16 = arith.maximumf %14, %15 : vector<128x256xf32>
    %c0_11 = arith.constant 0 : index
    %c0_12 = arith.constant 0 : index
    %17 = vector.load %arg6[%c0_11, %c0_12] : memref<1x128xf32, #tpu.memory_space<vmem>>, vector<1x128xf32>
    %cst_13 = arith.constant dense<0.000000e+00> : vector<1x256xf32>
    %18 = tpu.matmul %17, %16, %cst_13 {dimension_numbers = #tpu.dot_dimension_numbers<[1], [0], [0], [1], [0, 0, 1, 1], [], []>} : vector<1x128xf32>, vector<128x256xf32>, vector<1x256xf32> -> vector<1x256xf32>
    %c0_14 = arith.constant 0 : index
    %c0_15 = arith.constant 0 : index
    %19 = vector.load %arg7[%c0_14, %c0_15] : memref<1x1xf32, #tpu.memory_space<vmem>>, vector<1x1xf32>
    %20 = vector.broadcast %19 : vector<1x1xf32> to vector<1x256xf32>
    %21 = arith.addf %18, %20 : vector<1x256xf32>
    %c0_16 = arith.constant 0 : index
    %c0_17 = arith.constant 0 : index
    %22 = vector.load %arg8[%c0_16, %c0_17] : memref<1x256xf32, #tpu.memory_space<vmem>>, vector<1x256xf32>
    tpu.vector_store %arg8[%c0_16, %c0_17], %21 {strides = array<i32>} : memref<1x256xf32, #tpu.memory_space<vmem>>, vector<1x256xf32>,
    return
  }
  func.func @transform_0(%arg0: i32) -> (i32, i32) {
    %c0_i32 = arith.constant 0 : i32
    %c0_i32_0 = arith.constant 0 : i32
    return %c0_i32, %arg0 : i32, i32
  }
  func.func @transform_1(%arg0: i32) -> (i32, i32) {
    %c0_i32 = arith.constant 0 : i32
    %c0_i32_0 = arith.constant 0 : i32
    %c0_i32_1 = arith.constant 0 : i32
    return %c0_i32, %c0_i32_0 : i32, i32
  }
  func.func @transform_2(%arg0: i32) -> (i32, i32) {
    %c0_i32 = arith.constant 0 : i32
    %c0_i32_0 = arith.constant 0 : i32
    %c0_i32_1 = arith.constant 0 : i32
    return %c0_i32, %c0_i32_0 : i32, i32
  }
  func.func @transform_3(%arg0: i32) -> (i32, i32) {
    %c0_i32 = arith.constant 0 : i32
    %c0_i32_0 = arith.constant 0 : i32
    %c0_i32_1 = arith.constant 0 : i32
    return %c0_i32, %c0_i32_0 : i32, i32
  }
  func.func @transform_4(%arg0: i32) -> (i32, i32) {
    %c0_i32 = arith.constant 0 : i32
    %c0_i32_0 = arith.constant 0 : i32
    %c0_i32_1 = arith.constant 0 : i32
    return %c0_i32, %c0_i32_0 : i32, i32
  }
  func.func @transform_5(%arg0: i32) -> (i32, i32) {
    %c0_i32 = arith.constant 0 : i32
    %c0_i32_0 = arith.constant 0 : i32
    %c0_i32_1 = arith.constant 0 : i32
    return %c0_i32, %c0_i32_0 : i32, i32
  }
  func.func @transform_6(%arg0: i32) -> (i32, i32) {
    %c0_i32 = arith.constant 0 : i32
    %c0_i32_0 = arith.constant 0 : i32
    %c0_i32_1 = arith.constant 0 : i32
    return %c0_i32, %c0_i32_0 : i32, i32
  }
  func.func @transform_7(%arg0: i32) -> (i32, i32) {
    %c0_i32 = arith.constant 0 : i32
    %c0_i32_0 = arith.constant 0 : i32
    return %c0_i32, %arg0 : i32, i32
  }
}

</mosaic_0001>

<bundles_post_ra>
// kernel: net_forward.1
= control target key start
LH: loop header
LB: loop body
LE: loop exit
PB: predicated region body
PF: predicated region fallthrough
CT: control target
= control target key end

     0   :  { %s1176_s26 = smov 0   ;;  %s1458_s0 = inlined_call_operand.vmem [shape: f32[1,512], index: 0, kind: input, shape index: {}]   ;;  %s1459_s1 = inlined_call_operand.vmem [shape: f32[128,1], index: 1, kind: input, shape index: {}]   ;;  %s1460_s2 = inlined_call_operand.vmem [shape: f32[128,1], index: 2, kind: input, shape index: {}]   ;;  %s1461_s3 = inlined_call_operand.vmem [shape: f32[128,128], index: 3, kind: input, shape index: {}]   ;;  %s1462_s4 = inlined_call_operand.vmem [shape: f32[128,1], index: 4, kind: input, shape index: {}]   ;;  %s1463_s5 = inlined_call_operand.vmem [shape: f32[1,128], index: 5, kind: input, shape index: {}]   ;;  %s1464_s6 = inlined_call_operand.<no memory space> [shape: f32[1,1], index: 6, kind: input, shape index: {}]   ;;  %s1465_s7 = inlined_call_operand.vmem [shape: f32[1,512], index: 7, kind: output, shape index: {}]  }
   0x1   :  { %v12_v0 = vstv %s1464_s6 }
   0x2   :  { %13 = vst [vmem:[#allocation2] sm:$0x1] %v12_v0 }
   0x3 LB: > { %s1036_s27 = sadd.s32 4294967295, %s1128_s26   ;;  %p1040_p0 = scmp.ge.s32.totalorder %s1128_s26, 1  ;;  %s1128_s26 = sphi %s1176_s26, %s19_s26  }
   0x4   : > { %p239_p1 = scmp.lt.s32.totalorder %s1128_s26, 3 }
   0x6   : > { %p240_p2 = pnand %p1040_p0, %p239_p1 }
   0x7   : > { %v419_v1 = vld [vmem:[%s1460_s2] sm:$0xff] (!%p240_p2)  ;;  %v1130_v3 = vmov (!%p240_p2), 0   ;;  %v420_v4 = vld [vmem:[%s1460_s2 + $0x8] sm:$0xff] (!%p240_p2)  ;;  %v283_v6 = vld [vmem:[%s1459_s1 + $0x18] sm:$0xff] (!%p240_p2)  ;;  %v1131_v40 = vmov (!%p240_p2), 0.0   ;;  %s1041_s12 = sshll.u32 (!%p240_p2), %s1036_s27, 1  ;;  %v377_v52 = vlaneseq (!%p240_p2) }
   0x8   : > { %243 = sbr.rel (%p240_p2) target bundleno = 712 (0x2c8), region = 48  ;;  %v280_v2 = vld [vmem:[%s1459_s1] sm:$0xff] (!%p240_p2)  ;;  %1121 = vset.pattern.permute.xlu1 (!%p240_p2), %v1130_v3  ;;  %1120 = vset.pattern.permute.xlu0 (!%p240_p2), %v1130_v3  ;;  %v281_v5 = vld [vmem:[%s1459_s1 + $0x8] sm:$0xff] (!%p240_p2)  ;;  %v282_v7 = vld [vmem:[%s1459_s1 + $0x10] sm:$0xff] (!%p240_p2)  ;;  %p270_p3 = scmp.lt.s32.totalorder (!%p240_p2), %s1041_s12, 3 }
   0x9   : > { %437 = vperm.xlu1 (!%p240_p2), %1121, %v419_v1   ;;  %298 = vperm.xlu0 (!%p240_p2), %1120, %v280_v2   ;;  %v422_v8 = vld [vmem:[%s1460_s2 + $0x18] sm:$0xff] (!%p240_p2)  ;;  %v421_v9 = vld [vmem:[%s1460_s2 + $0x10] sm:$0xff] (!%p240_p2)  ;;  %v285_v10 = vld [vmem:[%s1459_s1 + $0x28] sm:$0xff] (!%p240_p2)  ;;  %v1335_v53 = vshrl.u32 (!%p240_p2), %v377_v52, 7  ;;  %vm986_vm0 = vcmp.lt.s32.totalorder (!%p240_p2), %v377_v52, 256 }
   0xa   : > { %v284_v11 = vld [vmem:[%s1459_s1 + $0x20] sm:$0xff] (!%p240_p2)  ;;  %v424_v12 = vld [vmem:[%s1460_s2 + $0x28] sm:$0xff] (!%p240_p2)  ;;  %v287_v14 = vld [vmem:[%s1459_s1 + $0x38] sm:$0xff] (!%p240_p2)  ;;  %755 = vmatprep.mubr.f32.mxu0 (!%p240_p2), %v1131_v40  ;;  %959 = vmatprep.mubr.f32.mxu1 (!%p240_p2), %v1131_v40 }
   0xb   : > { %v423_v13 = vld [vmem:[%s1460_s2 + $0x20] sm:$0xff] (!%p240_p2)  ;;  %v286_v15 = vld [vmem:[%s1459_s1 + $0x30] sm:$0xff] (!%p240_p2)  ;;  %v426_v16 = vld [vmem:[%s1460_s2 + $0x38] sm:$0xff] (!%p240_p2)  ;;  %v379_v54 = vsub.s32 (!%p240_p2), 0, %v1335_v53  ;;  %v383_v55 = vsub.s32 (!%p240_p2), 1, %v1335_v53 }
   0xc   : > { %v425_v17 = vld [vmem:[%s1460_s2 + $0x30] sm:$0xff] (!%p240_p2)  ;;  %v289_v18 = vld [vmem:[%s1459_s1 + $0x48] sm:$0xff] (!%p240_p2)  ;;  %v288_v19 = vld [vmem:[%s1459_s1 + $0x40] sm:$0xff] (!%p240_p2) }
   0xd   : > { %442 = vperm.xlu1 (!%p240_p2), %1121, %v420_v4   ;;  %303 = vperm.xlu0 (!%p240_p2), %1120, %v281_v5   ;;  %v428_v20 = vld [vmem:[%s1460_s2 + $0x48] sm:$0xff] (!%p240_p2)  ;;  %v427_v21 = vld [vmem:[%s1460_s2 + $0x40] sm:$0xff] (!%p240_p2)  ;;  %v291_v22 = vld [vmem:[%s1459_s1 + $0x58] sm:$0xff] (!%p240_p2) }
   0xe   : > { %v290_v23 = vld [vmem:[%s1459_s1 + $0x50] sm:$0xff] (!%p240_p2)  ;;  %v430_v24 = vld [vmem:[%s1460_s2 + $0x58] sm:$0xff] (!%p240_p2)  ;;  %v293_v26 = vld [vmem:[%s1459_s1 + $0x68] sm:$0xff] (!%p240_p2) }
   0xf   : > { %v429_v25 = vld [vmem:[%s1460_s2 + $0x50] sm:$0xff]  ;;  %v292_v27 = vld [vmem:[%s1459_s1 + $0x60] sm:$0xff]  ;;  %v432_v28 = vld [vmem:[%s1460_s2 + $0x68] sm:$0xff]  ;;  %s1467_s12 = smov (!%p270_p3, %s1041_s12), 3 }
  0x10   : > { %v431_v29 = vld [vmem:[%s1460_s2 + $0x60] sm:$0xff]  ;;  %v295_v30 = vld [vmem:[%s1459_s1 + $0x78] sm:$0xff]  ;;  %v294_v31 = vld [vmem:[%s1459_s1 + $0x70] sm:$0xff]  ;;  %s272_s15 = scalar_lea.vmem %s1458_s0, %s1467_s12  ;;  %s277_s30 = scalar_lea.vmem %s1465_s7, %s1467_s12 }
  0x11   : > { %313 = vperm.xlu1 %1121, %v283_v6   ;;  %308 = vperm.xlu0 %1120, %v282_v7   ;;  %v434_v32 = vld [vmem:[%s1460_s2 + $0x78] sm:$0xff]  ;;  %v433_v33 = vld [vmem:[%s1460_s2 + $0x70] sm:$0xff]  ;;  %v596_v34 = vld [vmem:[%s1462_s4 + $0x8] sm:$0xff] }
  0x12   : > { %v595_v35 = vld [vmem:[%s1462_s4] sm:$0xff]  ;;  %v598_v36 = vld [vmem:[%s1462_s4 + $0x18] sm:$0xff]  ;;  %v597_v37 = vld [vmem:[%s1462_s4 + $0x10] sm:$0xff] }
  0x13   : > { %v600_v38 = vld [vmem:[%s1462_s4 + $0x28] sm:$0xff]  ;;  %v599_v39 = vld [vmem:[%s1462_s4 + $0x20] sm:$0xff]  ;;  %v602_v41 = vld [vmem:[%s1462_s4 + $0x38] sm:$0xff] }
  0x14   : > { %v601_v42 = vld [vmem:[%s1462_s4 + $0x30] sm:$0xff]  ;;  %v604_v43 = vld [vmem:[%s1462_s4 + $0x48] sm:$0xff]  ;;  %v603_v44 = vld [vmem:[%s1462_s4 + $0x40] sm:$0xff] }
  0x15   : > { %452 = vperm.xlu1 %1121, %v422_v8   ;;  %447 = vperm.xlu0 %1120, %v421_v9   ;;  %v606_v45 = vld [vmem:[%s1462_s4 + $0x58] sm:$0xff]  ;;  %v605_v46 = vld [vmem:[%s1462_s4 + $0x50] sm:$0xff]  ;;  %v608_v47 = vld [vmem:[%s1462_s4 + $0x68] sm:$0xff] }
  0x16   : > { %v607_v48 = vld [vmem:[%s1462_s4 + $0x60] sm:$0xff]  ;;  %v610_v49 = vld [vmem:[%s1462_s4 + $0x78] sm:$0xff]  ;;  %v609_v50 = vld [vmem:[%s1462_s4 + $0x70] sm:$0xff] }
  0x17   : > { %v885_v51 = vld [vmem:[#allocation2] sm:$0x1] }
  0x18   : > { %v279_v56 = vld [vmem:[%s272_s15] sm:$0x3] }
  0x19   : > { %323 = vperm.xlu1 %1121, %v285_v10   ;;  %318 = vperm.xlu0 %1120, %v284_v11   ;;  %v1345_v57 = vrot.slane %v279_v56, %v379_v54  ;;  %v1347_v58 = vrot.slane %v279_v56, %v383_v55 }
  0x1d   : > { %462 = vperm.xlu1 %1121, %v424_v12   ;;  %457 = vperm.xlu0 %1120, %v423_v13  }
  0x21   : > { %333 = vperm.xlu1 %1121, %v287_v14   ;;  %328 = vperm.xlu0 %1120, %v286_v15  }
  0x25   : > { %472 = vperm.xlu1 %1121, %v426_v16   ;;  %467 = vperm.xlu0 %1120, %v425_v17  }
  0x29   : > { %343 = vperm.xlu1 %1121, %v289_v18   ;;  %338 = vperm.xlu0 %1120, %v288_v19  }
  0x2d   : > { %482 = vperm.xlu1 %1121, %v428_v20   ;;  %477 = vperm.xlu0 %1120, %v427_v21  }
  0x31   : > { %353 = vperm.xlu1 %1121, %v291_v22   ;;  %348 = vperm.xlu0 %1120, %v290_v23  }
  0x35   : > { %492 = vperm.xlu1 %1121, %v430_v24   ;;  %487 = vperm.xlu0 %1120, %v429_v25  }
  0x39   : > { %363 = vperm.xlu1 %1121, %v293_v26   ;;  %358 = vperm.xlu0 %1120, %v292_v27  }
  0x3d   : > { %502 = vperm.xlu1 %1121, %v432_v28   ;;  %497 = vperm.xlu0 %1120, %v431_v29  }
  0x41   : > { %373 = vperm.xlu1 %1121, %v295_v30   ;;  %368 = vperm.xlu0 %1120, %v294_v31  }
  0x45   : > { %512 = vperm.xlu1 %1121, %v434_v32   ;;  %507 = vperm.xlu0 %1120, %v433_v33  }
  0x49   : > { %618 = vperm.xlu1 %1121, %v596_v34   ;;  %613 = vperm.xlu0 %1120, %v595_v35  }
  0x4d   : > { %628 = vperm.xlu1 %1121, %v598_v36   ;;  %623 = vperm.xlu0 %1120, %v597_v37  }
  0x51   : > { %638 = vperm.xlu1 %1121, %v600_v38   ;;  %633 = vperm.xlu0 %1120, %v599_v39  }
  0x55   : > { %648 = vperm.xlu1 %1121, %v602_v41   ;;  %643 = vperm.xlu0 %1120, %v601_v42  }
  0x59   : > { %658 = vperm.xlu1 %1121, %v604_v43   ;;  %653 = vperm.xlu0 %1120, %v603_v44  }
  0x5d   : > { %668 = vperm.xlu1 %1121, %v606_v45   ;;  %663 = vperm.xlu0 %1120, %v605_v46  }
  0x61   : > { %678 = vperm.xlu1 %1121, %v608_v47   ;;  %673 = vperm.xlu0 %1120, %v607_v48  }
  0x65   : > { %688 = vperm.xlu1 %1121, %v610_v49   ;;  %683 = vperm.xlu0 %1120, %v609_v50  }
  0x69   : > { %888 = vperm.xlu0 %1120, %v885_v51  }
  0x88   : > { %v438_v59 = vpop.permute.xlu1 %437  ;;  %v299_v60 = vpop.permute.xlu0 %298 }
  0x89   : > { %v387_v61 = vmul.f32 %v1345_v57, %v299_v60  ;;  %v388_v62 = vmul.f32 %v1347_v58, %v299_v60 }
  0x8b   : > { %v515_v3 = vadd.f32 %v438_v59, %v387_v61  ;;  %v516_v4 = vadd.f32 %v438_v59, %v388_v62 }
  0x8c   : > { %v443_v63 = vpop.permute.xlu1 %442  ;;  %v304_v0 = vpop.permute.xlu0 %303 }
  0x8d   : > { %v389_v1 = vmul.f32 %v1345_v57, %v304_v0  ;;  %v390_v2 = vmul.f32 %v1347_v58, %v304_v0  ;;  %v548_v9 = vmax.f32 %v516_v4, 0.0  ;;  %v547_v11 = vmax.f32 %v515_v3, 0.0 }
  0x8f   : > { %v517_v5 = vadd.f32 %v443_v63, %v389_v1  ;;  %v518_v6 = vadd.f32 %v443_v63, %v390_v2 }
  0x90   : > { %v314_v7 = vpop.permute.xlu1 %313  ;;  %v309_v8 = vpop.permute.xlu0 %308 }
  0x91   : > { %v550_v10 = vmax.f32 %v518_v6, 0.0  ;;  %v549_v12 = vmax.f32 %v517_v5, 0.0  ;;  %v393_v13 = vmul.f32 %v1345_v57, %v314_v7  ;;  %v394_v14 = vmul.f32 %v1347_v58, %v314_v7 }
  0x92   : > { %v391_v15 = vmul.f32 %v1345_v57, %v309_v8  ;;  %v392_v16 = vmul.f32 %v1347_v58, %v309_v8 }
  0x93   : > { %v1045_v19 = vpack.c.bf16 %v550_v10, %v548_v9  ;;  %v1047_v20 = vpack.c.bf16 %v549_v12, %v547_v11 }
  0x94   : > { %v453_v17 = vpop.permute.xlu1 %452  ;;  %v448_v18 = vpop.permute.xlu0 %447 }
  0x95   : > { %v521_v21 = vadd.f32 %v453_v17, %v393_v13  ;;  %v522_v22 = vadd.f32 %v453_v17, %v394_v14  ;;  %v519_v23 = vadd.f32 %v448_v18, %v391_v15  ;;  %v520_v24 = vadd.f32 %v448_v18, %v392_v16  ;;  %1046 = vmatprep.subr.bf16.mxu0 %v1045_v19 }
  0x96   : > { %1048 = vmatpush1.bf16.msra.mxu0 %v1047_v20 }
  0x97   : > { %v553_v25 = vmax.f32 %v521_v21, 0.0  ;;  %v554_v26 = vmax.f32 %v522_v22, 0.0  ;;  %v551_v27 = vmax.f32 %v519_v23, 0.0  ;;  %v552_v28 = vmax.f32 %v520_v24, 0.0 }
  0x98   : > { %v324_v29 = vpop.permute.xlu1 %323  ;;  %v319_v30 = vpop.permute.xlu0 %318 }
  0x99   : > { %v1049_v31 = vpack.c.bf16 %v554_v26, %v552_v28  ;;  %v1051_v32 = vpack.c.bf16 %v553_v25, %v551_v27  ;;  %v397_v33 = vmul.f32 %v1345_v57, %v324_v29  ;;  %v398_v34 = vmul.f32 %v1347_v58, %v324_v29 }
  0x9a   : > { %v395_v35 = vmul.f32 %v1345_v57, %v319_v30  ;;  %v396_v36 = vmul.f32 %v1347_v58, %v319_v30 }
  0x9b   : > { %1050 = vmatprep.subr.bf16.mxu0 %v1049_v31 }
  0x9c   : > { %v463_v37 = vpop.permute.xlu1 %462  ;;  %v458_v38 = vpop.permute.xlu0 %457  ;;  %1052 = vmatpush1.bf16.msra.mxu0 %v1051_v32 }
  0x9d   : > { %v525_v39 = vadd.f32 %v463_v37, %v397_v33  ;;  %v526_v41 = vadd.f32 %v463_v37, %v398_v34  ;;  %v523_v42 = vadd.f32 %v458_v38, %v395_v35  ;;  %v524_v43 = vadd.f32 %v458_v38, %v396_v36 }
  0x9f   : > { %v557_v44 = vmax.f32 %v525_v39, 0.0  ;;  %v558_v45 = vmax.f32 %v526_v41, 0.0  ;;  %v555_v46 = vmax.f32 %v523_v42, 0.0  ;;  %v556_v47 = vmax.f32 %v524_v43, 0.0 }
  0xa0   : > { %v334_v48 = vpop.permute.xlu1 %333  ;;  %v329_v49 = vpop.permute.xlu0 %328 }
  0xa1   : > { %v1053_v50 = vpack.c.bf16 %v558_v45, %v556_v47  ;;  %v1055_v51 = vpack.c.bf16 %v557_v44, %v555_v46  ;;  %v401_v55 = vmul.f32 %v1345_v57, %v334_v48  ;;  %v402_v56 = vmul.f32 %v1347_v58, %v334_v48 }
  0xa2   : > { %v399_v59 = vmul.f32 %v1345_v57, %v329_v49  ;;  %v400_v60 = vmul.f32 %v1347_v58, %v329_v49 }
  0xa3   : > { %1054 = vmatprep.subr.bf16.mxu0 %v1053_v50 }
  0xa4   : > { %v473_v61 = vpop.permute.xlu1 %472  ;;  %v468_v62 = vpop.permute.xlu0 %467  ;;  %1056 = vmatpush1.bf16.msra.mxu0 %v1055_v51 }
  0xa5   : > { %v529_v63 = vadd.f32 %v473_v61, %v401_v55  ;;  %v530_v0 = vadd.f32 %v473_v61, %v402_v56  ;;  %v527_v1 = vadd.f32 %v468_v62, %v399_v59  ;;  %v528_v2 = vadd.f32 %v468_v62, %v400_v60 }
  0xa7   : > { %v561_v3 = vmax.f32 %v529_v63, 0.0  ;;  %v562_v4 = vmax.f32 %v530_v0, 0.0  ;;  %v559_v5 = vmax.f32 %v527_v1, 0.0  ;;  %v560_v6 = vmax.f32 %v528_v2, 0.0 }
  0xa8   : > { %v344_v7 = vpop.permute.xlu1 %343  ;;  %v339_v8 = vpop.permute.xlu0 %338 }
  0xa9   : > { %v1057_v9 = vpack.c.bf16 %v562_v4, %v560_v6  ;;  %v1059_v10 = vpack.c.bf16 %v561_v3, %v559_v5  ;;  %v405_v11 = vmul.f32 %v1345_v57, %v344_v7  ;;  %v406_v12 = vmul.f32 %v1347_v58, %v344_v7 }
  0xaa   : > { %v403_v13 = vmul.f32 %v1345_v57, %v339_v8  ;;  %v404_v14 = vmul.f32 %v1347_v58, %v339_v8 }
  0xab   : > { %1058 = vmatprep.subr.bf16.mxu0 %v1057_v9 }
  0xac   : > { %v483_v15 = vpop.permute.xlu1 %482  ;;  %v478_v16 = vpop.permute.xlu0 %477  ;;  %1060 = vmatpush1.bf16.msra.mxu0 %v1059_v10 }
  0xad   : > { %v533_v17 = vadd.f32 %v483_v15, %v405_v11  ;;  %v534_v18 = vadd.f32 %v483_v15, %v406_v12  ;;  %v531_v19 = vadd.f32 %v478_v16, %v403_v13  ;;  %v532_v20 = vadd.f32 %v478_v16, %v404_v14 }
  0xaf   : > { %v565_v21 = vmax.f32 %v533_v17, 0.0  ;;  %v566_v22 = vmax.f32 %v534_v18, 0.0  ;;  %v563_v23 = vmax.f32 %v531_v19, 0.0  ;;  %v564_v24 = vmax.f32 %v532_v20, 0.0 }
  0xb0   : > { %v354_v25 = vpop.permute.xlu1 %353  ;;  %v349_v26 = vpop.permute.xlu0 %348 }
  0xb1   : > { %v1061_v27 = vpack.c.bf16 %v566_v22, %v564_v24  ;;  %v1063_v28 = vpack.c.bf16 %v565_v21, %v563_v23  ;;  %v409_v29 = vmul.f32 %v1345_v57, %v354_v25  ;;  %v410_v30 = vmul.f32 %v1347_v58, %v354_v25  ;;  %v581_v23 = vld [vmem:[%s1461_s3 + $0x10] sm:$0xff]  ;;  %v582_v24 = vld [vmem:[%s1461_s3 + $0x18] sm:$0xff]  ;;  %v583_v25 = vld [vmem:[%s1461_s3 + $0x20] sm:$0xff] }
  0xb2   : > { %v407_v31 = vmul.f32 %v1345_v57, %v349_v26  ;;  %v408_v32 = vmul.f32 %v1347_v58, %v349_v26  ;;  %v584_v26 = vld [vmem:[%s1461_s3 + $0x28] sm:$0xff] }
  0xb3   : > { %1062 = vmatprep.subr.bf16.mxu0 %v1061_v27  ;;  %v585_v27 = vld [vmem:[%s1461_s3 + $0x30] sm:$0xff] }
  0xb4   : > { %v493_v33 = vpop.permute.xlu1 %492  ;;  %v488_v34 = vpop.permute.xlu0 %487  ;;  %1064 = vmatpush1.bf16.msra.mxu0 %v1063_v28  ;;  %v586_v28 = vld [vmem:[%s1461_s3 + $0x38] sm:$0xff] }
  0xb5   : > { %v537_v35 = vadd.f32 %v493_v33, %v409_v29  ;;  %v538_v36 = vadd.f32 %v493_v33, %v410_v30  ;;  %v535_v37 = vadd.f32 %v488_v34, %v407_v31  ;;  %v536_v38 = vadd.f32 %v488_v34, %v408_v32  ;;  %v587_v29 = vld [vmem:[%s1461_s3 + $0x40] sm:$0xff]  ;;  %v588_v30 = vld [vmem:[%s1461_s3 + $0x48] sm:$0xff]  ;;  %v589_v31 = vld [vmem:[%s1461_s3 + $0x50] sm:$0xff] }
  0xb6   : > { %v590_v32 = vld [vmem:[%s1461_s3 + $0x58] sm:$0xff]  ;;  %v591_v33 = vld [vmem:[%s1461_s3 + $0x60] sm:$0xff]  ;;  %v592_v34 = vld [vmem:[%s1461_s3 + $0x68] sm:$0xff] }
  0xb7   : > { %v569_v39 = vmax.f32 %v537_v35, 0.0  ;;  %v570_v41 = vmax.f32 %v538_v36, 0.0  ;;  %v567_v42 = vmax.f32 %v535_v37, 0.0  ;;  %v568_v43 = vmax.f32 %v536_v38, 0.0  ;;  %v593_v35 = vld [vmem:[%s1461_s3 + $0x70] sm:$0xff]  ;;  %v594_v36 = vld [vmem:[%s1461_s3 + $0x78] sm:$0xff] }
  0xb8   : > { %v364_v44 = vpop.permute.xlu1 %363  ;;  %v359_v45 = vpop.permute.xlu0 %358 }
  0xb9   : > { %v1065_v46 = vpack.c.bf16 %v570_v41, %v568_v43  ;;  %v1067_v47 = vpack.c.bf16 %v569_v39, %v567_v42  ;;  %v413_v48 = vmul.f32 %v1345_v57, %v364_v44  ;;  %v414_v49 = vmul.f32 %v1347_v58, %v364_v44 }
  0xba   : > { %v411_v50 = vmul.f32 %v1345_v57, %v359_v45  ;;  %v412_v51 = vmul.f32 %v1347_v58, %v359_v45 }
  0xbb   : > { %1066 = vmatprep.subr.bf16.mxu0 %v1065_v46 }
  0xbc   : > { %v503_v55 = vpop.permute.xlu1 %502  ;;  %v498_v56 = vpop.permute.xlu0 %497  ;;  %1068 = vmatpush1.bf16.msra.mxu0 %v1067_v47 }
  0xbd   : > { %v541_v59 = vadd.f32 %v503_v55, %v413_v48  ;;  %v542_v60 = vadd.f32 %v503_v55, %v414_v49  ;;  %v539_v61 = vadd.f32 %v498_v56, %v411_v50  ;;  %v540_v62 = vadd.f32 %v498_v56, %v412_v51 }
  0xbf   : > { %v573_v63 = vmax.f32 %v541_v59, 0.0  ;;  %v574_v0 = vmax.f32 %v542_v60, 0.0  ;;  %v571_v1 = vmax.f32 %v539_v61, 0.0  ;;  %v572_v2 = vmax.f32 %v540_v62, 0.0 }
  0xc0   : > { %v374_v3 = vpop.permute.xlu1 %373  ;;  %v369_v4 = vpop.permute.xlu0 %368 }
  0xc1   : > { %v1069_v5 = vpack.c.bf16 %v574_v0, %v572_v2  ;;  %v1071_v6 = vpack.c.bf16 %v573_v63, %v571_v1  ;;  %v417_v7 = vmul.f32 %v1345_v57, %v374_v3  ;;  %v418_v8 = vmul.f32 %v1347_v58, %v374_v3 }
  0xc2   : > { %v415_v9 = vmul.f32 %v1345_v57, %v369_v4  ;;  %v416_v10 = vmul.f32 %v1347_v58, %v369_v4  ;;  %v579_v57 = vld [vmem:[%s1461_s3] sm:$0xff]  ;;  %v580_v58 = vld [vmem:[%s1461_s3 + $0x8] sm:$0xff] }
  0xc3   : > { %1070 = vmatprep.subr.bf16.mxu0 %v1069_v5 }
  0xc4   : > { %v513_v11 = vpop.permute.xlu1 %512  ;;  %v508_v12 = vpop.permute.xlu0 %507  ;;  %1072 = vmatpush1.bf16.msra.mxu0 %v1071_v6 }
  0xc5   : > { %v545_v13 = vadd.f32 %v513_v11, %v417_v7  ;;  %v546_v14 = vadd.f32 %v513_v11, %v418_v8  ;;  %v543_v15 = vadd.f32 %v508_v12, %v415_v9  ;;  %v544_v16 = vadd.f32 %v508_v12, %v416_v10 }
  0xc7   : > { %v577_v17 = vmax.f32 %v545_v13, 0.0  ;;  %v578_v18 = vmax.f32 %v546_v14, 0.0  ;;  %v575_v19 = vmax.f32 %v543_v15, 0.0  ;;  %v576_v20 = vmax.f32 %v544_v16, 0.0 }
  0xc8   : > { %v614_v39 = vpop.permute.xlu0 %613  ;;  %v619_v42 = vpop.permute.xlu1 %618 }
  0xc9   : > { %v1073_v21 = vpack.c.bf16 %v578_v18, %v576_v20  ;;  %v1075_v22 = vpack.c.bf16 %v577_v17, %v575_v19 }
  0xcb   : > { %1074 = vmatprep.subr.bf16.mxu0 %v1073_v21 }
  0xcc   : > { %1076 = vmatpush1.bf16.msra.mxu0 %v1075_v22  ;;  %v624_v59 = vpop.permute.xlu0 %623  ;;  %v629_v62 = vpop.permute.xlu1 %628 }
  0xcf   : > { %756 = vmatmul.mubr.f32.vlgmr.msra.gmra.mrb[0].mxu0 %v579_v57 }
  0xd0   : > { %761 = vmatprep.mubr.f32.mxu0 %v1131_v40  ;;  %v634_v11 = vpop.permute.xlu0 %633  ;;  %v639_v14 = vpop.permute.xlu1 %638 }
  0xd3   : > { %762 = vmatmul.mubr.f32.gmra.mrb[2].mxu0 %v580_v58 }
  0xd4   : > { %767 = vmatprep.mubr.f32.mxu0 %v1131_v40 }
  0xd7   : > { %768 = vmatmul.mubr.f32.gmra.mrb[4].mxu0 %v581_v23 }
  0xd8   : > { %773 = vmatprep.mubr.f32.mxu0 %v1131_v40 }
  0xdb   : > { %774 = vmatmul.mubr.f32.gmra.mrb[6].mxu0 %v582_v24 }
  0xdc   : > { %779 = vmatprep.mubr.f32.mxu0 %v1131_v40 }
  0xdf   : > { %780 = vmatmul.mubr.f32.gmra.mrb[8].mxu0 %v583_v25  ;;  %v644_v25 = vpop.permute.xlu0 %643 }
  0xe0   : > { %785 = vmatprep.mubr.f32.mxu0 %v1131_v40 }
  0xe3   : > { %786 = vmatmul.mubr.f32.gmra.mrb[10].mxu0 %v584_v26 }
  0xe4   : > { %791 = vmatprep.mubr.f32.mxu0 %v1131_v40 }
  0xe7   : > { %792 = vmatmul.mubr.f32.gmra.mrb[12].mxu0 %v585_v27 }
  0xe8   : > { %797 = vmatprep.mubr.f32.mxu0 %v1131_v40 }
  0xeb   : > { %798 = vmatmul.mubr.f32.gmra.mrb[14].mxu0 %v586_v28  ;;  %v649_v28 = vpop.permute.xlu1 %648 }
  0xec   : > { %803 = vmatprep.mubr.f32.mxu0 %v1131_v40 }
  0xef   : > { %804 = vmatmul.mubr.f32.gmra.mrb[16].mxu0 %v587_v29 }
  0xf0   : > { %809 = vmatprep.mubr.f32.mxu0 %v1131_v40 }
  0xf3   : > { %810 = vmatmul.mubr.f32.gmra.mrb[18].mxu0 %v588_v30 }
  0xf4   : > { %815 = vmatprep.mubr.f32.mxu0 %v1131_v40 }
  0xf7   : > { %816 = vmatmul.mubr.f32.gmra.mrb[20].mxu0 %v589_v31 }
  0xf8   : > { %821 = vmatprep.mubr.f32.mxu0 %v1131_v40 }
  0xfb   : > { %822 = vmatmul.mubr.f32.gmra.mrb[22].mxu0 %v590_v32 }
  0xfc   : > { %827 = vmatprep.mubr.f32.mxu0 %v1131_v40 }
  0xff   : > { %828 = vmatmul.mubr.f32.gmra.mrb[24].mxu0 %v591_v33 }
 0x100   : > { %833 = vmatprep.mubr.f32.mxu0 %v1131_v40 }
 0x103   : > { %834 = vmatmul.mubr.f32.gmra.mrb[26].mxu0 %v592_v34 }
 0x104   : > { %839 = vmatprep.mubr.f32.mxu0 %v1131_v40 }
 0x107   : > { %840 = vmatmul.mubr.f32.gmra.mrb[28].mxu0 %v593_v35 }
 0x108   : > { %845 = vmatprep.mubr.f32.mxu0 %v1131_v40 }
 0x10b   : > { %846 = vmatmul.mubr.f32.gmra.mrb[30].mxu0 %v594_v36 }
 0x1a2   : > { %v757_v37 = vpop.f32.mrb[0].mxu0 }
 0x1a3   : > { %v759_v38 = vpop.f32.mrb[1].mxu0  ;;  %v758_v41 = vadd.f32 %v757_v37, %v614_v39 }
 0x1a4   : > { %v760_v43 = vadd.f32 %v759_v38, %v614_v39 }
 0x1a5   : > { %v852_v48 = vmax.f32 %v758_v41, 0.0 }
 0x1a6   : > { %v763_v44 = vpop.f32.mrb[2].mxu0  ;;  %v853_v50 = vmax.f32 %v760_v43, 0.0 }
 0x1a7   : > { %v764_v45 = vadd.f32 %v763_v44, %v619_v42  ;;  %v765_v46 = vpop.f32.mrb[3].mxu0 }
 0x1a8   : > { %v766_v47 = vadd.f32 %v765_v46, %v619_v42  ;;  %v654_v42 = vpop.permute.xlu0 %653 }
 0x1a9   : > { %v854_v49 = vmax.f32 %v764_v45, 0.0  ;;  %v659_v45 = vpop.permute.xlu1 %658 }
 0x1aa   : > { %v855_v51 = vmax.f32 %v766_v47, 0.0  ;;  %v769_v40 = vpop.f32.mrb[4].mxu0 }
 0x1ab   : > { %v771_v55 = vpop.f32.mrb[5].mxu0  ;;  %v1079_v56 = vpack.c.bf16 %v854_v49, %v852_v48  ;;  %v770_v61 = vadd.f32 %v769_v40, %v624_v59 }
 0x1ac   : > { %v1077_v60 = vpack.c.bf16 %v855_v51, %v853_v50  ;;  %v772_v63 = vadd.f32 %v771_v55, %v624_v59 }
 0x1ad   : > { %v856_v4 = vmax.f32 %v770_v61, 0.0 }
 0x1ae   : > { %v775_v0 = vpop.f32.mrb[6].mxu0  ;;  %1078 = vmatprep.subr.bf16.mxu1 %v1077_v60  ;;  %v857_v6 = vmax.f32 %v772_v63, 0.0 }
 0x1af   : > { %v776_v1 = vadd.f32 %v775_v0, %v629_v62  ;;  %v777_v2 = vpop.f32.mrb[7].mxu0  ;;  %1080 = vmatpush1.bf16.msra.mxu1 %v1079_v56 }
 0x1b0   : > { %v778_v3 = vadd.f32 %v777_v2, %v629_v62  ;;  %v664_v62 = vpop.permute.xlu0 %663 }
 0x1b1   : > { %v858_v5 = vmax.f32 %v776_v1, 0.0  ;;  %v669_v1 = vpop.permute.xlu1 %668 }
 0x1b2   : > { %v859_v7 = vmax.f32 %v778_v3, 0.0  ;;  %v781_v8 = vpop.f32.mrb[8].mxu0 }
 0x1b3   : > { %v1083_v9 = vpack.c.bf16 %v858_v5, %v856_v4  ;;  %v783_v10 = vpop.f32.mrb[9].mxu0  ;;  %v782_v13 = vadd.f32 %v781_v8, %v634_v11 }
 0x1b4   : > { %v1081_v12 = vpack.c.bf16 %v859_v7, %v857_v6  ;;  %v784_v15 = vadd.f32 %v783_v10, %v634_v11 }
 0x1b5   : > { %v860_v20 = vmax.f32 %v782_v13, 0.0 }
 0x1b6   : > { %v787_v16 = vpop.f32.mrb[10].mxu0  ;;  %1082 = vmatprep.subr.bf16.mxu1 %v1081_v12  ;;  %v861_v22 = vmax.f32 %v784_v15, 0.0 }
 0x1b7   : > { %v788_v17 = vadd.f32 %v787_v16, %v639_v14  ;;  %v789_v18 = vpop.f32.mrb[11].mxu0  ;;  %1084 = vmatpush1.bf16.msra.mxu1 %v1083_v9 }
 0x1b8   : > { %v790_v19 = vadd.f32 %v789_v18, %v639_v14  ;;  %v674_v14 = vpop.permute.xlu0 %673 }
 0x1b9   : > { %v862_v21 = vmax.f32 %v788_v17, 0.0  ;;  %v679_v17 = vpop.permute.xlu1 %678 }
 0x1ba   : > { %v863_v57 = vmax.f32 %v790_v19, 0.0  ;;  %v793_v58 = vpop.f32.mrb[12].mxu0 }
 0x1bb   : > { %v1087_v23 = vpack.c.bf16 %v862_v21, %v860_v20  ;;  %v795_v24 = vpop.f32.mrb[13].mxu0  ;;  %v794_v27 = vadd.f32 %v793_v58, %v644_v25 }
 0x1bc   : > { %v1085_v26 = vpack.c.bf16 %v863_v57, %v861_v22  ;;  %v796_v29 = vadd.f32 %v795_v24, %v644_v25 }
 0x1bd   : > { %v864_v34 = vmax.f32 %v794_v27, 0.0 }
 0x1be   : > { %v799_v30 = vpop.f32.mrb[14].mxu0  ;;  %1086 = vmatprep.subr.bf16.mxu1 %v1085_v26  ;;  %v865_v36 = vmax.f32 %v796_v29, 0.0 }
 0x1bf   : > { %v800_v31 = vadd.f32 %v799_v30, %v649_v28  ;;  %v801_v32 = vpop.f32.mrb[15].mxu0  ;;  %1088 = vmatpush1.bf16.msra.mxu1 %v1087_v23 }
 0x1c0   : > { %v802_v33 = vadd.f32 %v801_v32, %v649_v28  ;;  %v684_v28 = vpop.permute.xlu0 %683 }
 0x1c1   : > { %v866_v35 = vmax.f32 %v800_v31, 0.0  ;;  %v689_v31 = vpop.permute.xlu1 %688 }
 0x1c2   : > { %v867_v37 = vmax.f32 %v802_v33, 0.0  ;;  %v805_v38 = vpop.f32.mrb[16].mxu0 }
 0x1c3   : > { %v1091_v39 = vpack.c.bf16 %v866_v35, %v864_v34  ;;  %v807_v41 = vpop.f32.mrb[17].mxu0  ;;  %v806_v44 = vadd.f32 %v805_v38, %v654_v42 }
 0x1c4   : > { %v1089_v43 = vpack.c.bf16 %v867_v37, %v865_v36  ;;  %v808_v46 = vadd.f32 %v807_v41, %v654_v42 }
 0x1c5   : > { %v868_v51 = vmax.f32 %v806_v44, 0.0  ;;  %v884_v44 = vld [vmem:[%s1463_s5] sm:$0x1] }
 0x1c6   : > { %v811_v47 = vpop.f32.mrb[18].mxu0  ;;  %1090 = vmatprep.subr.bf16.mxu1 %v1089_v43  ;;  %v869_v55 = vmax.f32 %v808_v46, 0.0 }
 0x1c7   : > { %v812_v48 = vadd.f32 %v811_v47, %v659_v45  ;;  %v813_v49 = vpop.f32.mrb[19].mxu0  ;;  %1092 = vmatpush1.bf16.msra.mxu1 %v1091_v39  ;;  %v889_v47 = vpop.permute.xlu0 %888 }
 0x1c8   : > { %v814_v50 = vadd.f32 %v813_v49, %v659_v45  ;;  %v1132_v45 = vmov 1966171168   ;;  %v894_v49 = vrot.slane %v889_v47, %v379_v54 }
 0x1c9   : > { %v870_v40 = vmax.f32 %v812_v48, 0.0  ;;  %v970_v46 = vunpack.c.l.s4 %v1132_v45 }
 0x1ca   : > { %v871_v56 = vmax.f32 %v814_v50, 0.0  ;;  %v817_v59 = vpop.f32.mrb[20].mxu0 }
 0x1cb   : > { %v1095_v60 = vpack.c.bf16 %v870_v40, %v868_v51  ;;  %v819_v61 = vpop.f32.mrb[21].mxu0  ;;  %v818_v0 = vadd.f32 %v817_v59, %v664_v62  ;;  %v971_v48 = vunpack.c.0.s8 %v970_v46 }
 0x1cc   : > { %v1093_v63 = vpack.c.bf16 %v871_v56, %v869_v55  ;;  %v820_v2 = vadd.f32 %v819_v61, %v664_v62 }
 0x1cd   : > { %v872_v7 = vmax.f32 %v818_v0, 0.0  ;;  %v974_v56 = vsub.s32 %v971_v48, %v1335_v53 }
 0x1ce   : > { %v823_v3 = vpop.f32.mrb[22].mxu0  ;;  %1094 = vmatprep.subr.bf16.mxu1 %v1093_v63  ;;  %v873_v9 = vmax.f32 %v820_v2, 0.0 }
 0x1cf   : > { %v824_v4 = vadd.f32 %v823_v3, %v669_v1  ;;  %v825_v5 = vpop.f32.mrb[23].mxu0  ;;  %1096 = vmatpush1.bf16.msra.mxu1 %v1095_v60 }
 0x1d0   : > { %v826_v6 = vadd.f32 %v825_v5, %v669_v1 }
 0x1d1   : > { %v874_v8 = vmax.f32 %v824_v4, 0.0 }
 0x1d2   : > { %v875_v10 = vmax.f32 %v826_v6, 0.0  ;;  %v829_v11 = vpop.f32.mrb[24].mxu0 }
 0x1d3   : > { %v1099_v12 = vpack.c.bf16 %v874_v8, %v872_v7  ;;  %v831_v13 = vpop.f32.mrb[25].mxu0  ;;  %v830_v16 = vadd.f32 %v829_v11, %v674_v14 }
 0x1d4   : > { %v1097_v15 = vpack.c.bf16 %v875_v10, %v873_v9  ;;  %v832_v18 = vadd.f32 %v831_v13, %v674_v14 }
 0x1d5   : > { %v876_v57 = vmax.f32 %v830_v16, 0.0 }
 0x1d6   : > { %v835_v19 = vpop.f32.mrb[26].mxu0  ;;  %1098 = vmatprep.subr.bf16.mxu1 %v1097_v15  ;;  %v877_v23 = vmax.f32 %v832_v18, 0.0 }
 0x1d7   : > { %v836_v20 = vadd.f32 %v835_v19, %v679_v17  ;;  %v837_v21 = vpop.f32.mrb[27].mxu0  ;;  %1100 = vmatpush1.bf16.msra.mxu1 %v1099_v12 }
 0x1d8   : > { %v838_v22 = vadd.f32 %v837_v21, %v679_v17 }
 0x1d9   : > { %v878_v58 = vmax.f32 %v836_v20, 0.0 }
 0x1da   : > { %v879_v24 = vmax.f32 %v838_v22, 0.0  ;;  %v841_v25 = vpop.f32.mrb[28].mxu0 }
 0x1db   : > { %v1103_v26 = vpack.c.bf16 %v878_v58, %v876_v57  ;;  %v843_v27 = vpop.f32.mrb[29].mxu0  ;;  %v842_v30 = vadd.f32 %v841_v25, %v684_v28 }
 0x1dc   : > { %v1101_v29 = vpack.c.bf16 %v879_v24, %v877_v23  ;;  %v844_v32 = vadd.f32 %v843_v27, %v684_v28 }
 0x1dd   : > { %v880_v37 = vmax.f32 %v842_v30, 0.0 }
 0x1de   : > { %v847_v33 = vpop.f32.mrb[30].mxu0  ;;  %1102 = vmatprep.subr.bf16.mxu1 %v1101_v29  ;;  %v881_v39 = vmax.f32 %v844_v32, 0.0 }
 0x1df   : > { %v848_v34 = vadd.f32 %v847_v33, %v689_v31  ;;  %v849_v35 = vpop.f32.mrb[31].mxu0  ;;  %1104 = vmatpush1.bf16.msra.mxu1 %v1103_v26 }
 0x1e0   : > { %v850_v36 = vadd.f32 %v849_v35, %v689_v31 }
 0x1e1   : > { %v882_v38 = vmax.f32 %v848_v34, 0.0 }
 0x1e2   : > { %v883_v41 = vmax.f32 %v850_v36, 0.0 }
 0x1e3   : > { %v1107_v42 = vpack.c.bf16 %v882_v38, %v880_v37 }
 0x1e4   : > { %v1105_v43 = vpack.c.bf16 %v883_v41, %v881_v39 }
 0x1e6   : > { %1106 = vmatprep.subr.bf16.mxu1 %v1105_v43 }
 0x1e7   : > { %1108 = vmatpush1.bf16.msra.mxu1 %v1107_v42 }
 0x1ea   : > { %960 = vmatmul.mubr.f32.vlgmr.msra.gmra.mrb[0].mxu1 %v884_v44 }
 0x2bd   : > { %v961_v50 = vpop.f32.mrb[0].mxu1 }
 0x2be   : > { %v962_v51 = vadd.f32 %v961_v50, %v894_v49  ;;  %v963_v40 = vpop.f32.mrb[1].mxu1 }
 0x2bf   : > { %v964_v55 = vadd.f32 %v963_v40, %v894_v49 }
 0x2c1   : > { %v968_v59 = vcombine.low %v962_v51, %v964_v55 }
 0x2c3   : > { %v975_v60 = vrot.slane %v968_v59, %v974_v56 }
 0x2c5   : > { %v982_v61 = vrot.slane %v975_v60, %v974_v56 }
 0x2c7   : > { %988 = vst.msk [vmem:[%s277_s30] sm:$0x3] %vm986_vm0, %v982_v61 }
 0x2c8 PF: > { %s19_s26 = sadd.s32 1, %s1128_s26  }
 0x2c9   : > { %p16_p4 = scmp.ge.s32.totalorder %s19_s26, 4  }
 0x2cb   :  { %18 = sbr.rel (!%p16_p4) target bundleno = 3 (0x3), region = 78 }

</bundles_post_ra>
